<compile_context>
chip_gen: v7x
topology: tpu7x:2x2x1
jax: 0.10.0
libtpu: 0.0.40
codegen_flags: <defaults>
</compile_context>

<pallas_src>
import jax
import jax.numpy as jnp
from jax.experimental import pallas as pl
from jax.experimental.pallas import tpu as pltpu


# ----------------------------------------------------------------------------
# Fused kernel: all RNN layers + final Linear.
#   ref order: x_flat, (Wih^T, Whh^T, b)*num_layers, Wfc^T, b_fc, out, seq_scratch
#   x_flat is (T*B, D) in TIME-MAJOR order, so rows [t*B:(t+1)*B] == timestep t.
# ----------------------------------------------------------------------------
def _make_fused_kernel(num_layers, T, B):
    def kernel(*refs):
        n_in = 1 + 3 * num_layers + 2
        x_ref = refs[0]
        layer_refs = refs[1:1 + 3 * num_layers]
        fcw_ref = refs[1 + 3 * num_layers]
        fcb_ref = refs[2 + 3 * num_layers]
        out_ref = refs[n_in]
        seq_ref = refs[n_in + 1]          # VMEM scratch (T*B, H) for inter-layer seq

        cur = x_ref[...].astype(jnp.float32)          # (T*B, D_in) for current layer
        h = None
        for l in range(num_layers):
            wih_ref, whh_ref, b_ref = layer_refs[3 * l:3 * l + 3]
            # Hoisted input projection + bias: ONE batched matmul for all timesteps.
            z = (jnp.dot(cur, wih_ref[...], preferred_element_type=jnp.float32)
                 + b_ref[...])                        # (T*B, H)
            whh = whh_ref[...]                        # (H, H), loaded once
            H = whh.shape[0]
            h = jnp.zeros((B, H), jnp.float32)        # h0 = zeros (as in PyTorch)
            last = (l == num_layers - 1)
            # Fully-unrolled recurrence: only h @ Whh^T on the serial critical path.
            for t in range(T):
                h = jnp.tanh(jnp.dot(h, whh, preferred_element_type=jnp.float32)
                             + z[t * B:(t + 1) * B, :])
                if not last:
                    seq_ref[t * B:(t + 1) * B, :] = h  # feed next layer, stays in VMEM
            if not last:
                cur = seq_ref[...]
        # Final Linear on the last timestep's hidden state of the last layer.
        out_ref[...] = (jnp.dot(h, fcw_ref[...], preferred_element_type=jnp.float32)
                        + fcb_ref[...]).astype(out_ref.dtype)
    return kernel


def rnn_price_predictor_forward(x, params):
    """Forward pass matching RNN_price_predictor.forward.  x: (B, T, input_size)."""
    B, T, D = x.shape
    layers = params["rnn_layers"]
    num_layers = len(layers)
    H = layers[0][0].shape[1]
    O = params["fc_w_t"].shape[1]

    # Time-major flat input so rows [t*B:(t+1)*B] are timestep t (layout plumbing
    # done in the wrapper, outside the kernel).
    x_flat = jnp.transpose(x, (1, 0, 2)).reshape(T * B, D)

    args = [x_flat]
    for (wih_t, whh_t, b) in layers:
        args += [wih_t, whh_t, b]
    args += [params["fc_w_t"], params["fc_b"]]

    kernel = _make_fused_kernel(num_layers, T, B)
    return pl.pallas_call(
        kernel,
        out_shape=jax.ShapeDtypeStruct((B, O), jnp.float32),
        scratch_shapes=[pltpu.VMEM((T * B, H), jnp.float32)],
    )(*args)


# ----------------------------------------------------------------------------
# Parameter construction (mirrors nn.RNN / nn.Linear shapes & PyTorch's
# U(-1/sqrt(H), 1/sqrt(H)) init). Weights are pre-transposed for (B,D)@(D,H).
# ----------------------------------------------------------------------------
def init_params(key, input_size, hidden_size, num_layers, output_size):
    k = 1.0 / jnp.sqrt(jnp.float32(hidden_size))
    params = {"rnn_layers": []}
    for layer in range(num_layers):
        d_in = input_size if layer == 0 else hidden_size
        key, k1, k2, k3, k4 = jax.random.split(key, 5)
        w_ih = jax.random.uniform(k1, (hidden_size, d_in), jnp.float32, -k, k)
        w_hh = jax.random.uniform(k2, (hidden_size, hidden_size), jnp.float32, -k, k)
        b_ih = jax.random.uniform(k3, (hidden_size,), jnp.float32, -k, k)
        b_hh = jax.random.uniform(k4, (hidden_size,), jnp.float32, -k, k)
        params["rnn_layers"].append(
            (w_ih.T, w_hh.T, (b_ih + b_hh).reshape(1, hidden_size)))
    key, k5, k6 = jax.random.split(key, 3)
    kf = 1.0 / jnp.sqrt(jnp.float32(hidden_size))
    w_fc = jax.random.uniform(k5, (output_size, hidden_size), jnp.float32, -kf, kf)
    b_fc = jax.random.uniform(k6, (output_size,), jnp.float32, -kf, kf)
    params["fc_w_t"] = w_fc.T
    params["fc_b"] = b_fc.reshape(1, output_size)
    return params


# ----------------------------------------------------------------------------
# Pure-JAX reference for a correctness sanity check.
# ----------------------------------------------------------------------------
def _reference_forward(x, params):
    h_seq = x
    for (wih_t, whh_t, b) in params["rnn_layers"]:
        B, T, _ = h_seq.shape
        H = wih_t.shape[1]
        h = jnp.zeros((B, H), jnp.float32)
        outs = []
        for t in range(T):
            h = jnp.tanh(h_seq[:, t, :] @ wih_t + h @ whh_t + b)
            outs.append(h)
        h_seq = jnp.stack(outs, axis=1)
    return h_seq[:, -1, :] @ params["fc_w_t"] + params["fc_b"]


if __name__ == "__main__":
    # Small shapes consistent with the module's forward (batch_first input).
    batch, seq = 2, 8
    input_size, hidden_size, num_layers, output_size = 4, 32, 2, 1

    key = jax.random.PRNGKey(0)
    key, xkey = jax.random.split(key)
    x = jax.random.normal(xkey, (batch, seq, input_size), jnp.float32)

    params = init_params(key, input_size, hidden_size, num_layers, output_size)

    fwd = jax.jit(rnn_price_predictor_forward)
    out = fwd(x, params)
    out = jax.block_until_ready(out)
    assert out.shape == (batch, output_size)

    ref = _reference_forward(x, params)
    assert jnp.allclose(out, ref, atol=1e-5, rtol=1e-5), "mismatch vs reference"

    print("KERNEL_OK")
</pallas_src>

<mosaic_0001>
module attributes {stable_mosaic.version = 11 : i64} {
  func.func @kernel(%arg0: memref<16x4xf32, #tpu.memory_space<vmem>>, %arg1: memref<4x32xf32, #tpu.memory_space<vmem>>, %arg2: memref<32x32xf32, #tpu.memory_space<vmem>>, %arg3: memref<1x32xf32, #tpu.memory_space<vmem>>, %arg4: memref<32x32xf32, #tpu.memory_space<vmem>>, %arg5: memref<32x32xf32, #tpu.memory_space<vmem>>, %arg6: memref<1x32xf32, #tpu.memory_space<vmem>>, %arg7: memref<32x1xf32, #tpu.memory_space<vmem>>, %arg8: memref<1x1xf32, #tpu.memory_space<vmem>>, %arg9: memref<2x1xf32, #tpu.memory_space<vmem>>, %arg10: memref<16x32xf32, #tpu.memory_space<vmem>>) attributes {dimension_semantics = [], scalar_prefetch = 0 : i64, scratch_operands = 1 : i64, tpu.core_type = #tpu.core_type<tc>} {
    %c0 = arith.constant 0 : index
    %c0_0 = arith.constant 0 : index
    %0 = vector.load %arg0[%c0, %c0_0] : memref<16x4xf32, #tpu.memory_space<vmem>>, vector<16x4xf32>
    %c0_1 = arith.constant 0 : index
    %c0_2 = arith.constant 0 : index
    %1 = vector.load %arg1[%c0_1, %c0_2] : memref<4x32xf32, #tpu.memory_space<vmem>>, vector<4x32xf32>
    %cst = arith.constant dense<0.000000e+00> : vector<16x32xf32>
    %2 = tpu.matmul %0, %1, %cst {dimension_numbers = #tpu.dot_dimension_numbers<[1], [0], [0], [1], [0, 0, 1, 1], [], []>} : vector<16x4xf32>, vector<4x32xf32>, vector<16x32xf32> -> vector<16x32xf32>
    %c0_3 = arith.constant 0 : index
    %c0_4 = arith.constant 0 : index
    %3 = vector.load %arg3[%c0_3, %c0_4] : memref<1x32xf32, #tpu.memory_space<vmem>>, vector<1x32xf32>
    %4 = vector.broadcast %3 : vector<1x32xf32> to vector<16x32xf32>
    %5 = arith.addf %2, %4 : vector<16x32xf32>
    %c0_5 = arith.constant 0 : index
    %c0_6 = arith.constant 0 : index
    %6 = vector.load %arg2[%c0_5, %c0_6] : memref<32x32xf32, #tpu.memory_space<vmem>>, vector<32x32xf32>
    %cst_7 = arith.constant 0.000000e+00 : f32
    %7 = vector.broadcast %cst_7 : f32 to vector<2x32xf32>
    %cst_8 = arith.constant dense<0.000000e+00> : vector<2x32xf32>
    %8 = tpu.matmul %7, %6, %cst_8 {dimension_numbers = #tpu.dot_dimension_numbers<[1], [0], [0], [1], [0, 0, 1, 1], [], []>} : vector<2x32xf32>, vector<32x32xf32>, vector<2x32xf32> -> vector<2x32xf32>
    %9 = vector.extract_strided_slice %5 {offsets = [0, 0], sizes = [2, 32], strides = [1, 1]} : vector<16x32xf32> to vector<2x32xf32>
    %10 = arith.addf %8, %9 : vector<2x32xf32>
    %11 = math.tanh %10 : vector<2x32xf32>
    %c0_9 = arith.constant 0 : index
    %c0_10 = arith.constant 0 : index
    %12 = vector.load %arg10[%c0_9, %c0_10] : memref<16x32xf32, #tpu.memory_space<vmem>>, vector<2x32xf32>
    tpu.vector_store %arg10[%c0_9, %c0_10], %11 {strides = array<i32>} : memref<16x32xf32, #tpu.memory_space<vmem>>, vector<2x32xf32>,
    %cst_11 = arith.constant dense<0.000000e+00> : vector<2x32xf32>
    %13 = tpu.matmul %11, %6, %cst_11 {dimension_numbers = #tpu.dot_dimension_numbers<[1], [0], [0], [1], [0, 0, 1, 1], [], []>} : vector<2x32xf32>, vector<32x32xf32>, vector<2x32xf32> -> vector<2x32xf32>
    %14 = vector.extract_strided_slice %5 {offsets = [2, 0], sizes = [2, 32], strides = [1, 1]} : vector<16x32xf32> to vector<2x32xf32>
    %15 = arith.addf %13, %14 : vector<2x32xf32>
    %16 = math.tanh %15 : vector<2x32xf32>
    %c2 = arith.constant 2 : index
    %c0_12 = arith.constant 0 : index
    %17 = vector.load %arg10[%c2, %c0_12] : memref<16x32xf32, #tpu.memory_space<vmem>>, vector<2x32xf32>
    tpu.vector_store %arg10[%c2, %c0_12], %16 {strides = array<i32>} : memref<16x32xf32, #tpu.memory_space<vmem>>, vector<2x32xf32>,
    %cst_13 = arith.constant dense<0.000000e+00> : vector<2x32xf32>
    %18 = tpu.matmul %16, %6, %cst_13 {dimension_numbers = #tpu.dot_dimension_numbers<[1], [0], [0], [1], [0, 0, 1, 1], [], []>} : vector<2x32xf32>, vector<32x32xf32>, vector<2x32xf32> -> vector<2x32xf32>
    %19 = vector.extract_strided_slice %5 {offsets = [4, 0], sizes = [2, 32], strides = [1, 1]} : vector<16x32xf32> to vector<2x32xf32>
    %20 = arith.addf %18, %19 : vector<2x32xf32>
    %21 = math.tanh %20 : vector<2x32xf32>
    %c4 = arith.constant 4 : index
    %c0_14 = arith.constant 0 : index
    %22 = vector.load %arg10[%c4, %c0_14] : memref<16x32xf32, #tpu.memory_space<vmem>>, vector<2x32xf32>
    tpu.vector_store %arg10[%c4, %c0_14], %21 {strides = array<i32>} : memref<16x32xf32, #tpu.memory_space<vmem>>, vector<2x32xf32>,
    %cst_15 = arith.constant dense<0.000000e+00> : vector<2x32xf32>
    %23 = tpu.matmul %21, %6, %cst_15 {dimension_numbers = #tpu.dot_dimension_numbers<[1], [0], [0], [1], [0, 0, 1, 1], [], []>} : vector<2x32xf32>, vector<32x32xf32>, vector<2x32xf32> -> vector<2x32xf32>
    %24 = vector.extract_strided_slice %5 {offsets = [6, 0], sizes = [2, 32], strides = [1, 1]} : vector<16x32xf32> to vector<2x32xf32>
    %25 = arith.addf %23, %24 : vector<2x32xf32>
    %26 = math.tanh %25 : vector<2x32xf32>
    %c6 = arith.constant 6 : index
    %c0_16 = arith.constant 0 : index
    %27 = vector.load %arg10[%c6, %c0_16] : memref<16x32xf32, #tpu.memory_space<vmem>>, vector<2x32xf32>
    tpu.vector_store %arg10[%c6, %c0_16], %26 {strides = array<i32>} : memref<16x32xf32, #tpu.memory_space<vmem>>, vector<2x32xf32>,
    %cst_17 = arith.constant dense<0.000000e+00> : vector<2x32xf32>
    %28 = tpu.matmul %26, %6, %cst_17 {dimension_numbers = #tpu.dot_dimension_numbers<[1], [0], [0], [1], [0, 0, 1, 1], [], []>} : vector<2x32xf32>, vector<32x32xf32>, vector<2x32xf32> -> vector<2x32xf32>
    %29 = vector.extract_strided_slice %5 {offsets = [8, 0], sizes = [2, 32], strides = [1, 1]} : vector<16x32xf32> to vector<2x32xf32>
    %30 = arith.addf %28, %29 : vector<2x32xf32>
    %31 = math.tanh %30 : vector<2x32xf32>
    %c8 = arith.constant 8 : index
    %c0_18 = arith.constant 0 : index
    %32 = vector.load %arg10[%c8, %c0_18] : memref<16x32xf32, #tpu.memory_space<vmem>>, vector<2x32xf32>
    tpu.vector_store %arg10[%c8, %c0_18], %31 {strides = array<i32>} : memref<16x32xf32, #tpu.memory_space<vmem>>, vector<2x32xf32>,
    %cst_19 = arith.constant dense<0.000000e+00> : vector<2x32xf32>
    %33 = tpu.matmul %31, %6, %cst_19 {dimension_numbers = #tpu.dot_dimension_numbers<[1], [0], [0], [1], [0, 0, 1, 1], [], []>} : vector<2x32xf32>, vector<32x32xf32>, vector<2x32xf32> -> vector<2x32xf32>
    %34 = vector.extract_strided_slice %5 {offsets = [10, 0], sizes = [2, 32], strides = [1, 1]} : vector<16x32xf32> to vector<2x32xf32>
    %35 = arith.addf %33, %34 : vector<2x32xf32>
    %36 = math.tanh %35 : vector<2x32xf32>
    %c10 = arith.constant 10 : index
    %c0_20 = arith.constant 0 : index
    %37 = vector.load %arg10[%c10, %c0_20] : memref<16x32xf32, #tpu.memory_space<vmem>>, vector<2x32xf32>
    tpu.vector_store %arg10[%c10, %c0_20], %36 {strides = array<i32>} : memref<16x32xf32, #tpu.memory_space<vmem>>, vector<2x32xf32>,
    %cst_21 = arith.constant dense<0.000000e+00> : vector<2x32xf32>
    %38 = tpu.matmul %36, %6, %cst_21 {dimension_numbers = #tpu.dot_dimension_numbers<[1], [0], [0], [1], [0, 0, 1, 1], [], []>} : vector<2x32xf32>, vector<32x32xf32>, vector<2x32xf32> -> vector<2x32xf32>
    %39 = vector.extract_strided_slice %5 {offsets = [12, 0], sizes = [2, 32], strides = [1, 1]} : vector<16x32xf32> to vector<2x32xf32>
    %40 = arith.addf %38, %39 : vector<2x32xf32>
    %41 = math.tanh %40 : vector<2x32xf32>
    %c12 = arith.constant 12 : index
    %c0_22 = arith.constant 0 : index
    %42 = vector.load %arg10[%c12, %c0_22] : memref<16x32xf32, #tpu.memory_space<vmem>>, vector<2x32xf32>
    tpu.vector_store %arg10[%c12, %c0_22], %41 {strides = array<i32>} : memref<16x32xf32, #tpu.memory_space<vmem>>, vector<2x32xf32>,
    %cst_23 = arith.constant dense<0.000000e+00> : vector<2x32xf32>
    %43 = tpu.matmul %41, %6, %cst_23 {dimension_numbers = #tpu.dot_dimension_numbers<[1], [0], [0], [1], [0, 0, 1, 1], [], []>} : vector<2x32xf32>, vector<32x32xf32>, vector<2x32xf32> -> vector<2x32xf32>
    %44 = vector.extract_strided_slice %5 {offsets = [14, 0], sizes = [2, 32], strides = [1, 1]} : vector<16x32xf32> to vector<2x32xf32>
    %45 = arith.addf %43, %44 : vector<2x32xf32>
    %46 = math.tanh %45 : vector<2x32xf32>
    %c14 = arith.constant 14 : index
    %c0_24 = arith.constant 0 : index
    %47 = vector.load %arg10[%c14, %c0_24] : memref<16x32xf32, #tpu.memory_space<vmem>>, vector<2x32xf32>
    tpu.vector_store %arg10[%c14, %c0_24], %46 {strides = array<i32>} : memref<16x32xf32, #tpu.memory_space<vmem>>, vector<2x32xf32>,
    %c0_25 = arith.constant 0 : index
    %c0_26 = arith.constant 0 : index
    %48 = vector.load %arg10[%c0_25, %c0_26] : memref<16x32xf32, #tpu.memory_space<vmem>>, vector<16x32xf32>
    %c0_27 = arith.constant 0 : index
    %c0_28 = arith.constant 0 : index
    %49 = vector.load %arg4[%c0_27, %c0_28] : memref<32x32xf32, #tpu.memory_space<vmem>>, vector<32x32xf32>
    %cst_29 = arith.constant dense<0.000000e+00> : vector<16x32xf32>
    %50 = tpu.matmul %48, %49, %cst_29 {dimension_numbers = #tpu.dot_dimension_numbers<[1], [0], [0], [1], [0, 0, 1, 1], [], []>} : vector<16x32xf32>, vector<32x32xf32>, vector<16x32xf32> -> vector<16x32xf32>
    %c0_30 = arith.constant 0 : index
    %c0_31 = arith.constant 0 : index
    %51 = vector.load %arg6[%c0_30, %c0_31] : memref<1x32xf32, #tpu.memory_space<vmem>>, vector<1x32xf32>
    %52 = vector.broadcast %51 : vector<1x32xf32> to vector<16x32xf32>
    %53 = arith.addf %50, %52 : vector<16x32xf32>
    %c0_32 = arith.constant 0 : index
    %c0_33 = arith.constant 0 : index
    %54 = vector.load %arg5[%c0_32, %c0_33] : memref<32x32xf32, #tpu.memory_space<vmem>>, vector<32x32xf32>
    %cst_34 = arith.constant 0.000000e+00 : f32
    %55 = vector.broadcast %cst_34 : f32 to vector<2x32xf32>
    %cst_35 = arith.constant dense<0.000000e+00> : vector<2x32xf32>
    %56 = tpu.matmul %55, %54, %cst_35 {dimension_numbers = #tpu.dot_dimension_numbers<[1], [0], [0], [1], [0, 0, 1, 1], [], []>} : vector<2x32xf32>, vector<32x32xf32>, vector<2x32xf32> -> vector<2x32xf32>
    %57 = vector.extract_strided_slice %53 {offsets = [0, 0], sizes = [2, 32], strides = [1, 1]} : vector<16x32xf32> to vector<2x32xf32>
    %58 = arith.addf %56, %57 : vector<2x32xf32>
    %59 = math.tanh %58 : vector<2x32xf32>
    %cst_36 = arith.constant dense<0.000000e+00> : vector<2x32xf32>
    %60 = tpu.matmul %59, %54, %cst_36 {dimension_numbers = #tpu.dot_dimension_numbers<[1], [0], [0], [1], [0, 0, 1, 1], [], []>} : vector<2x32xf32>, vector<32x32xf32>, vector<2x32xf32> -> vector<2x32xf32>
    %61 = vector.extract_strided_slice %53 {offsets = [2, 0], sizes = [2, 32], strides = [1, 1]} : vector<16x32xf32> to vector<2x32xf32>
    %62 = arith.addf %60, %61 : vector<2x32xf32>
    %63 = math.tanh %62 : vector<2x32xf32>
    %cst_37 = arith.constant dense<0.000000e+00> : vector<2x32xf32>
    %64 = tpu.matmul %63, %54, %cst_37 {dimension_numbers = #tpu.dot_dimension_numbers<[1], [0], [0], [1], [0, 0, 1, 1], [], []>} : vector<2x32xf32>, vector<32x32xf32>, vector<2x32xf32> -> vector<2x32xf32>
    %65 = vector.extract_strided_slice %53 {offsets = [4, 0], sizes = [2, 32], strides = [1, 1]} : vector<16x32xf32> to vector<2x32xf32>
    %66 = arith.addf %64, %65 : vector<2x32xf32>
    %67 = math.tanh %66 : vector<2x32xf32>
    %cst_38 = arith.constant dense<0.000000e+00> : vector<2x32xf32>
    %68 = tpu.matmul %67, %54, %cst_38 {dimension_numbers = #tpu.dot_dimension_numbers<[1], [0], [0], [1], [0, 0, 1, 1], [], []>} : vector<2x32xf32>, vector<32x32xf32>, vector<2x32xf32> -> vector<2x32xf32>
    %69 = vector.extract_strided_slice %53 {offsets = [6, 0], sizes = [2, 32], strides = [1, 1]} : vector<16x32xf32> to vector<2x32xf32>
    %70 = arith.addf %68, %69 : vector<2x32xf32>
    %71 = math.tanh %70 : vector<2x32xf32>
    %cst_39 = arith.constant dense<0.000000e+00> : vector<2x32xf32>
    %72 = tpu.matmul %71, %54, %cst_39 {dimension_numbers = #tpu.dot_dimension_numbers<[1], [0], [0], [1], [0, 0, 1, 1], [], []>} : vector<2x32xf32>, vector<32x32xf32>, vector<2x32xf32> -> vector<2x32xf32>
    %73 = vector.extract_strided_slice %53 {offsets = [8, 0], sizes = [2, 32], strides = [1, 1]} : vector<16x32xf32> to vector<2x32xf32>
    %74 = arith.addf %72, %73 : vector<2x32xf32>
    %75 = math.tanh %74 : vector<2x32xf32>
    %cst_40 = arith.constant dense<0.000000e+00> : vector<2x32xf32>
    %76 = tpu.matmul %75, %54, %cst_40 {dimension_numbers = #tpu.dot_dimension_numbers<[1], [0], [0], [1], [0, 0, 1, 1], [], []>} : vector<2x32xf32>, vector<32x32xf32>, vector<2x32xf32> -> vector<2x32xf32>
    %77 = vector.extract_strided_slice %53 {offsets = [10, 0], sizes = [2, 32], strides = [1, 1]} : vector<16x32xf32> to vector<2x32xf32>
    %78 = arith.addf %76, %77 : vector<2x32xf32>
    %79 = math.tanh %78 : vector<2x32xf32>
    %cst_41 = arith.constant dense<0.000000e+00> : vector<2x32xf32>
    %80 = tpu.matmul %79, %54, %cst_41 {dimension_numbers = #tpu.dot_dimension_numbers<[1], [0], [0], [1], [0, 0, 1, 1], [], []>} : vector<2x32xf32>, vector<32x32xf32>, vector<2x32xf32> -> vector<2x32xf32>
    %81 = vector.extract_strided_slice %53 {offsets = [12, 0], sizes = [2, 32], strides = [1, 1]} : vector<16x32xf32> to vector<2x32xf32>
    %82 = arith.addf %80, %81 : vector<2x32xf32>
    %83 = math.tanh %82 : vector<2x32xf32>
    %cst_42 = arith.constant dense<0.000000e+00> : vector<2x32xf32>
    %84 = tpu.matmul %83, %54, %cst_42 {dimension_numbers = #tpu.dot_dimension_numbers<[1], [0], [0], [1], [0, 0, 1, 1], [], []>} : vector<2x32xf32>, vector<32x32xf32>, vector<2x32xf32> -> vector<2x32xf32>
    %85 = vector.extract_strided_slice %53 {offsets = [14, 0], sizes = [2, 32], strides = [1, 1]} : vector<16x32xf32> to vector<2x32xf32>
    %86 = arith.addf %84, %85 : vector<2x32xf32>
    %87 = math.tanh %86 : vector<2x32xf32>
    %c0_43 = arith.constant 0 : index
    %c0_44 = arith.constant 0 : index
    %88 = vector.load %arg7[%c0_43, %c0_44] : memref<32x1xf32, #tpu.memory_space<vmem>>, vector<32x1xf32>
    %cst_45 = arith.constant dense<0.000000e+00> : vector<2x1xf32>
    %89 = tpu.matmul %87, %88, %cst_45 {dimension_numbers = #tpu.dot_dimension_numbers<[1], [0], [0], [1], [0, 0, 1, 1], [], []>} : vector<2x32xf32>, vector<32x1xf32>, vector<2x1xf32> -> vector<2x1xf32>
    %c0_46 = arith.constant 0 : index
    %c0_47 = arith.constant 0 : index
    %90 = vector.load %arg8[%c0_46, %c0_47] : memref<1x1xf32, #tpu.memory_space<vmem>>, vector<1x1xf32>
    %91 = vector.broadcast %90 : vector<1x1xf32> to vector<2x1xf32>
    %92 = arith.addf %89, %91 : vector<2x1xf32>
    %c0_48 = arith.constant 0 : index
    %c0_49 = arith.constant 0 : index
    %93 = vector.load %arg9[%c0_48, %c0_49] : memref<2x1xf32, #tpu.memory_space<vmem>>, vector<2x1xf32>
    tpu.vector_store %arg9[%c0_48, %c0_49], %92 {strides = array<i32>} : memref<2x1xf32, #tpu.memory_space<vmem>>, vector<2x1xf32>,
    return
  }
}

</mosaic_0001>

<bundles_post_ra>
// kernel: rnn_price_predictor_forward.1
= control target key start
LH: loop header
LB: loop body
LE: loop exit
PB: predicated region body
PF: predicated region fallthrough
CT: control target
= control target key end

     0   :  { %s2320_s0 = inlined_call_operand.vmem [shape: f32[16,4], index: 0, kind: input, shape index: {}]   ;;  %s2321_s1 = inlined_call_operand.vmem [shape: f32[4,32], index: 1, kind: input, shape index: {}]   ;;  %s2322_s2 = inlined_call_operand.vmem [shape: f32[32,32], index: 2, kind: input, shape index: {}]   ;;  %s2323_s3 = inlined_call_operand.vmem [shape: f32[1,32], index: 3, kind: input, shape index: {}]   ;;  %s2324_s4 = inlined_call_operand.vmem [shape: f32[32,32], index: 4, kind: input, shape index: {}]   ;;  %s2325_s5 = inlined_call_operand.hbm [shape: f32[32,32], index: 5, kind: input, shape index: {}]   ;;  %s2326_s6 = inlined_call_operand.vmem [shape: f32[1,32], index: 6, kind: input, shape index: {}]   ;;  %s2327_s7 = inlined_call_operand.vmem [shape: f32[32,1], index: 7, kind: input, shape index: {}]   ;;  %s2328_s8 = inlined_call_operand.<no memory space> [shape: f32[1,1], index: 8, kind: input, shape index: {}]   ;;  %s2329_s9 = inlined_call_operand.vmem [shape: f32[2,1], index: 9, kind: output, shape index: {}]  }
   0x1   :  { %v14_v0 = vstv %s2328_s8 }
   0x2   :  { %15 = vst [vmem:[#allocation3] sm:$0x1] %v14_v0 }
   0x3   :  { %16 = vsyncpa [#allocation5], 0  ;;  %s2048_s11 = smov [#allocation4]   ;;  %s2024_s15 = scalar_lea.hbm %s2325_s5, 512 }
   0x4   :  { %s32_s12 = sshll.u32 %s2048_s11, 4  ;;  %p2025_p0 = scmp.ne.s32.totalorder %s2325_s5, %s2024_s15  ;;  %s33_s12 = int_to_ptr.vmem [resolvable:$true] %s32_s12 }
   0x5   :  { %p2028_p1 = scmp.lt.u32.totalorder %s2024_s15, %s2325_s5 }
   0x7   :  { %p2030_p2 = pnand %p2028_p1, %p2025_p0 }
   0x9   :  { %2033 = shalt.err (!%p2030_p2)
}
   0xa   :  { %s2034_s8 = scalar_lea.vmem %s33_s12, 512  ;;  %p2039_p4 = scmp.lt.s32.totalorder %s33_s12, %s33_s12 }
   0xb   :  { %p2035_p3 = scmp.ne.s32.totalorder %s33_s12, %s2034_s8  ;;  %p2040_p5 = scmp.lt.s32.totalorder %s2034_s8, %s2034_s8 }
   0xd   :  { %p2041_p6 = por %p2040_p5, %p2039_p4 }
   0xf   :  { %p2042_p7 = pnand %p2041_p6, %p2035_p3 }
  0x11   :  { %2045 = shalt.err (!%p2042_p7)
}
  0x12   :  { %s2049_s20 = smov 128   ;;  %s2050_s21 = smov 8  }
  0x13   :  { %38 = dma.hbm_to_vmem [thread:$0]  %s2325_s5, 512, %s33_s12, [#allocation5], %s2049_s20, %s2049_s20, %s2050_s21  }
  0x14   :  { %2046 = dma.done.wait [#allocation5], 512  }
  0x15   :  { %2047 = vsyncadd [#allocation5], 4294966784  ;;  %v2051_v1 = vmov 0.0|0.0   ;;  %vm2052_vm0 = vmmov 0   ;;  %v2053_v2 = vmov 0.0   ;;  %vm65_vm1 = vcmask 1043456  }
  0x16   :  { %1876 = vmatprep.subr.bf16.mxu1 %v2051_v1  ;;  %1686 = vmatprep.mubr.msk.f32.mxu1 %vm2052_vm0, %v2053_v2  ;;  %vm58_vm2 = vcmask 31744   ;;  %v144_v3 = vld [vmem:[%s2322_s2] sm:$0xff]  ;;  %v145_v4 = vld [vmem:[%s2322_s2 + $0x8] sm:$0xff]  ;;  %v146_v9 = vld [vmem:[%s2322_s2 + $0x10] sm:$0xff]  ;;  %vm223_vm3 = vcmask 254976   ;;  %vm148_vm4 = vcmask 261120  }
  0x17   :  { %v50_v5 = vld [vmem:[%s2321_s1] sm:$0xf]  ;;  %v2131_v6 = vpack.c.bf16 %v145_v4, %v144_v3  ;;  %v49_v8 = vld [vmem:[%s2320_s0 + $0x8] sm:$0xff]  ;;  %v147_v10 = vld [vmem:[%s2322_s2 + $0x18] sm:$0xff]  ;;  %vm1549_vm5 = vcmask 1024  }
  0x18   :  { %1673 = vmatprep.subr.msk.mxu0 %vm65_vm1, %v50_v5  ;;  %v48_v7 = vld [vmem:[%s2320_s0] sm:$0xff]  ;;  %v2146_v11 = vpack.c.bf16 %v147_v10, %v146_v9  ;;  %v767_v52 = vld [vmem:[%s2324_s4 + $0x8] sm:$0xff]  ;;  %v858_v54 = vld [vmem:[#allocation4] sm:$0xff] }
  0x19   :  { %1674 = vmatpush3.msk.msra.mxu0 %vm65_vm1, %v50_v5  ;;  %1675 = vmatprep.mubr.msk.f32.mxu0 %vm58_vm2, %v48_v7  ;;  %v1556_v12 = vld [vmem:[%s2323_s3] ss:$0 sm:$0xff]  ;;  %v768_v56 = vld [vmem:[%s2324_s4 + $0x10] sm:$0xff]  ;;  %v769_v58 = vld [vmem:[%s2324_s4 + $0x18] sm:$0xff] }
  0x1a   :  { %1878 = vmatpush3.bf16.msra.mxu1 %v2131_v6  ;;  %1676 = vmatmul.mubr.msk.f32.vlgmr.msra.gmra.mrb[0].mxu0 %vm58_vm2, %v49_v8  ;;  %v766_v51 = vld [vmem:[%s2324_s4] sm:$0xff]  ;;  %v861_v60 = vld [vmem:[#allocation4 + $0x18] sm:$0xff]  ;;  %v1928_v61 = vpack.c.bf16 %v769_v58, %v768_v56 }
  0x1b   :  { %1879 = vmatprep.subr.bf16.mxu1 %v2051_v1  ;;  %1882 = vmatprep.subr.bf16.mxu0 %v2051_v1  ;;  %v1924_v53 = vpack.c.bf16 %v767_v52, %v766_v51  ;;  %v859_v55 = vld [vmem:[#allocation4 + $0x8] sm:$0xff]  ;;  %v860_v59 = vld [vmem:[#allocation4 + $0x10] sm:$0xff] }
  0x1c   :  { %1884 = vmatpush3.bf16.msra.mxu0 %v2131_v6  ;;  %1697 = vmatprep.mubr.msk.f32.mxu0 %vm2052_vm0, %v2053_v2  ;;  %v2228_v57 = vpack.c.bf16 %v859_v55, %v858_v54  ;;  %v2234_v62 = vpack.c.bf16 %v861_v60, %v860_v59  ;;  %v1567_v9 = vld [vmem:[%s2326_s6] ss:$0 sm:$0xff]  ;;  %v1577_v55 = vld [vmem:[#allocation3] ss:$0 sm:$0xff] }
  0x1d   :  { %1885 = vmatprep.subr.bf16.mxu0 %v2051_v1 }
  0x1e   :  { %1881 = vmatpush3.bf16.msra.mxu1 %v2146_v11 }
  0x1f   :  { %1888 = vmatprep.subr.bf16.mxu1 %v2051_v1 }
  0x20   :  { %1887 = vmatpush3.bf16.msra.mxu0 %v2146_v11 }
  0x21   :  { %1687 = vmatmul.mubr.f32.vlgmr.msra.gmra.mrb[0].mxu1 %v2053_v2  ;;  %1894 = vmatprep.subr.bf16.mxu0 %v2051_v1 }
  0x22   :  { %1890 = vmatpush3.bf16.msra.mxu1 %v2131_v6  ;;  %1708 = vmatprep.mubr.msk.f32.mxu1 %vm2052_vm0, %v2053_v2 }
  0x23   :  { %1891 = vmatprep.subr.bf16.mxu1 %v2051_v1 }
  0x26   :  { %1893 = vmatpush3.bf16.msra.mxu1 %v2146_v11 }
  0x27   :  { %1900 = vmatprep.subr.bf16.mxu1 %v2051_v1 }
  0xed   :  { %v1677_v13 = vpop.f32.mrb[0].mxu0 }
  0xee   :  { %v2168_v14 = vadd.f32 %v1677_v13, %v1556_v12  ;;  %v135_v15 = vpop.f32.mrb[1].mxu0 }
  0xef   :  { %v136_v16 = vadd.f32 %v1556_v12, %v135_v15 }
  0xf0   :  { %v533_v40 = vrot.slane %v2168_v14, 2  ;;  %v610_v46 = vrot.slane %v2168_v14, 4  ;;  %v687_v63 = vrot.slane %v2168_v14, 6 }
  0xf1   :  { %v226_v21 = vrot.slane %v136_v16, 2  ;;  %v303_v26 = vrot.slane %v136_v16, 4  ;;  %v380_v31 = vrot.slane %v136_v16, 6 }
  0xf4   :  { %v218_v17 = vpop.f32.mrb[0].mxu1 }
  0xf5   :  { %v219_v18 = vadd.f32 %v218_v17, %v136_v16  ;;  %v1688_v19 = vpop.f32.mrb[1].mxu1 }
  0xf7   :  { %1992 = vtanh.f32 %v219_v18 }
 0x101   :  { %v1993_v20 = vpop.eup %1992 }
 0x102   :  { %224 = vst.msk [vmem:[#allocation2] sm:$0x3] %vm223_vm3, %v1993_v20  ;;  %1698 = vmatmul.mubr.msk.f32.vlgmr.msra.gmra.mrb[2].mxu0 %vm148_vm4, %v1993_v20 }
 0x103   :  { %1896 = vmatpush3.bf16.msra.mxu0 %v2131_v6  ;;  %1719 = vmatprep.mubr.msk.f32.mxu0 %vm2052_vm0, %v2053_v2 }
 0x104   :  { %1897 = vmatprep.subr.bf16.mxu0 %v2051_v1 }
 0x107   :  { %1899 = vmatpush3.bf16.msra.mxu0 %v2146_v11 }
 0x108   :  { %1906 = vmatprep.subr.bf16.mxu0 %v2051_v1 }
 0x1d5   :  { %v297_v22 = vpop.f32.mrb[2].mxu0 }
 0x1d6   :  { %v298_v23 = vadd.f32 %v297_v22, %v226_v21  ;;  %v1699_v24 = vpop.f32.mrb[3].mxu0 }
 0x1d8   :  { %1994 = vtanh.f32 %v298_v23 }
 0x1e2   :  { %v1995_v25 = vpop.eup %1994 }
 0x1e3   :  { %302 = vst.msk [vmem:[#allocation2 + $0x2] sm:$0x3] %vm223_vm3, %v1995_v25  ;;  %1709 = vmatmul.mubr.msk.f32.vlgmr.msra.gmra.mrb[2].mxu1 %vm148_vm4, %v1995_v25 }
 0x1e4   :  { %1902 = vmatpush3.bf16.msra.mxu1 %v2131_v6  ;;  %1730 = vmatprep.mubr.msk.f32.mxu1 %vm2052_vm0, %v2053_v2 }
 0x1e5   :  { %1903 = vmatprep.subr.bf16.mxu1 %v2051_v1 }
 0x1e8   :  { %1905 = vmatpush3.bf16.msra.mxu1 %v2146_v11 }
 0x1e9   :  { %1912 = vmatprep.subr.bf16.mxu1 %v2051_v1 }
 0x2b6   :  { %v374_v27 = vpop.f32.mrb[2].mxu1 }
 0x2b7   :  { %v375_v28 = vadd.f32 %v374_v27, %v303_v26  ;;  %v1710_v29 = vpop.f32.mrb[3].mxu1 }
 0x2b9   :  { %1996 = vtanh.f32 %v375_v28 }
 0x2c3   :  { %v1997_v30 = vpop.eup %1996 }
 0x2c4   :  { %379 = vst.msk [vmem:[#allocation2 + $0x4] sm:$0x3] %vm223_vm3, %v1997_v30  ;;  %1720 = vmatmul.mubr.msk.f32.vlgmr.msra.gmra.mrb[4].mxu0 %vm148_vm4, %v1997_v30 }
 0x2c5   :  { %1908 = vmatpush3.bf16.msra.mxu0 %v2131_v6  ;;  %1741 = vmatprep.mubr.msk.f32.mxu0 %vm2052_vm0, %v2053_v2 }
 0x2c6   :  { %1909 = vmatprep.subr.bf16.mxu0 %v2051_v1 }
 0x2c9   :  { %1911 = vmatpush3.bf16.msra.mxu0 %v2146_v11 }
 0x2ca   :  { %1918 = vmatprep.subr.bf16.mxu0 %v2051_v1 }
 0x397   :  { %v451_v32 = vpop.f32.mrb[4].mxu0 }
 0x398   :  { %v452_v33 = vadd.f32 %v451_v32, %v380_v31  ;;  %v1721_v34 = vpop.f32.mrb[5].mxu0 }
 0x39a   :  { %1998 = vtanh.f32 %v452_v33 }
 0x3a4   :  { %v1999_v35 = vpop.eup %1998 }
 0x3a5   :  { %456 = vst.msk [vmem:[#allocation2 + $0x6] sm:$0x3] %vm223_vm3, %v1999_v35  ;;  %1731 = vmatmul.mubr.msk.f32.vlgmr.msra.gmra.mrb[4].mxu1 %vm148_vm4, %v1999_v35 }
 0x3a6   :  { %1914 = vmatpush3.bf16.msra.mxu1 %v2131_v6  ;;  %1752 = vmatprep.mubr.msk.f32.mxu1 %vm2052_vm0, %v2053_v2 }
 0x3a7   :  { %1915 = vmatprep.subr.bf16.mxu1 %v2051_v1 }
 0x3aa   :  { %1917 = vmatpush3.bf16.msra.mxu1 %v2146_v11 }
 0x3ab   :  { %1925 = vmatprep.subr.bf16.mxu1 %v1924_v53 }
 0x3ac   :  { %v764_v45 = vld [vmem:[#allocation2] sm:$0xff] }
 0x478   :  { %v526_v36 = vpop.f32.mrb[4].mxu1 }
 0x479   :  { %v527_v37 = vadd.f32 %v526_v36, %v2168_v14  ;;  %v1732_v38 = vpop.f32.mrb[5].mxu1 }
 0x47b   :  { %2000 = vtanh.f32 %v527_v37 }
 0x485   :  { %v2001_v39 = vpop.eup %2000 }
 0x486   :  { %531 = vst.msk [vmem:[#allocation2 + $0x8] sm:$0x3] %vm223_vm3, %v2001_v39  ;;  %1742 = vmatmul.mubr.msk.f32.vlgmr.msra.gmra.mrb[6].mxu0 %vm148_vm4, %v2001_v39 }
 0x487   :  { %1920 = vmatpush3.bf16.msra.mxu0 %v2131_v6  ;;  %1763 = vmatprep.mubr.msk.f32.mxu0 %vm2052_vm0, %v2053_v2 }
 0x488   :  { %1921 = vmatprep.subr.bf16.mxu0 %v2051_v1 }
 0x48b   :  { %1923 = vmatpush3.bf16.msra.mxu0 %v2146_v11 }
 0x48c   :  { %1932 = vmatprep.subr.bf16.mxu0 %v2051_v1 }
 0x559   :  { %v604_v41 = vpop.f32.mrb[6].mxu0 }
 0x55a   :  { %v605_v42 = vadd.f32 %v604_v41, %v533_v40  ;;  %v1743_v43 = vpop.f32.mrb[7].mxu0 }
 0x55c   :  { %2002 = vtanh.f32 %v605_v42 }
 0x566   :  { %v2003_v44 = vpop.eup %2002 }
 0x567   :  { %609 = vst.msk [vmem:[#allocation2 + $0xa] sm:$0x3] %vm223_vm3, %v2003_v44  ;;  %1753 = vmatmul.mubr.msk.f32.vlgmr.msra.gmra.mrb[6].mxu1 %vm148_vm4, %v2003_v44 }
 0x568   :  { %1774 = vmatprep.mubr.msk.f32.mxu1 %vm148_vm4, %v764_v45  ;;  %1927 = vmatpush3.bf16.msra.mxu1 %v1924_v53  ;;  %v1465_v45 = vld [vmem:[%s2327_s7] sm:$0xff] }
 0x569   :  { %1929 = vmatprep.subr.bf16.mxu1 %v1928_v61 }
 0x56c   :  { %1931 = vmatpush3.bf16.msra.mxu1 %v1928_v61 }
 0x56d   :  { %1938 = vmatprep.subr.bf16.mxu1 %v2051_v1 }
 0x63a   :  { %v681_v47 = vpop.f32.mrb[6].mxu1 }
 0x63b   :  { %v682_v48 = vadd.f32 %v681_v47, %v610_v46  ;;  %v1754_v49 = vpop.f32.mrb[7].mxu1  ;;  %v1466_v46 = vld [vmem:[%s2327_s7 + $0x8] sm:$0xff] }
 0x63c   :  { %v1981_v47 = vpack.c.bf16 %v1466_v46, %v1465_v45 }
 0x63d   :  { %2004 = vtanh.f32 %v682_v48  ;;  %v1468_v48 = vld [vmem:[%s2327_s7 + $0x18] sm:$0xff] }
 0x647   :  { %v2005_v50 = vpop.eup %2004 }
 0x648   :  { %686 = vst.msk [vmem:[#allocation2 + $0xc] sm:$0x3] %vm223_vm3, %v2005_v50  ;;  %1764 = vmatmul.mubr.msk.f32.vlgmr.msra.gmra.mrb[8].mxu0 %vm148_vm4, %v2005_v50 }
 0x649   :  { %1785 = vmatprep.mubr.msk.f32.mxu0 %vm2052_vm0, %v2053_v2  ;;  %1934 = vmatpush3.bf16.msra.mxu0 %v2228_v57 }
 0x64a   :  { %1935 = vmatprep.subr.bf16.mxu0 %v2051_v1 }
 0x64d   :  { %1937 = vmatpush3.bf16.msra.mxu0 %v2234_v62 }
 0x64e   :  { %1944 = vmatprep.subr.bf16.mxu0 %v2051_v1 }
 0x650   :  { %1786 = vmatmul.mubr.f32.vlgmr.msra.gmra.mrb[10].mxu0 %v2053_v2 }
 0x651   :  { %1946 = vmatpush3.bf16.msra.mxu0 %v2228_v57  ;;  %1807 = vmatprep.mubr.msk.f32.mxu0 %vm2052_vm0, %v2053_v2 }
 0x652   :  { %1947 = vmatprep.subr.bf16.mxu0 %v2051_v1 }
 0x655   :  { %1949 = vmatpush3.bf16.msra.mxu0 %v2234_v62 }
 0x656   :  { %1956 = vmatprep.subr.bf16.mxu0 %v2051_v1 }
 0x71b   :  { %v758_v0 = vpop.f32.mrb[8].mxu0 }
 0x71c   :  { %v759_v3 = vadd.f32 %v758_v0, %v687_v63  ;;  %v1765_v4 = vpop.f32.mrb[9].mxu0 }
 0x71e   :  { %2006 = vtanh.f32 %v759_v3 }
 0x723   :  { %v928_v7 = vpop.f32.mrb[10].mxu0 }
 0x724   :  { %v1787_v8 = vpop.f32.mrb[11].mxu0 }
 0x728   :  { %v2007_v5 = vpop.eup %2006 }
 0x729   :  { %763 = vst.msk [vmem:[#allocation2 + $0xe] sm:$0x3] %vm223_vm3, %v2007_v5 }
 0x730   :  { %v765_v6 = vld [vmem:[#allocation2 + $0x8] sm:$0xff] }
 0x731   :  { %1775 = vmatmul.mubr.msk.f32.vlgmr.msra.gmra.mrb[8].mxu1 %vm148_vm4, %v765_v6 }
 0x732   :  { %1940 = vmatpush3.bf16.msra.mxu1 %v2228_v57  ;;  %1796 = vmatprep.mubr.msk.f32.mxu1 %vm2052_vm0, %v2053_v2 }
 0x733   :  { %1941 = vmatprep.subr.bf16.mxu1 %v2051_v1 }
 0x736   :  { %1943 = vmatpush3.bf16.msra.mxu1 %v2234_v62 }
 0x737   :  { %1950 = vmatprep.subr.bf16.mxu1 %v2051_v1 }
 0x804   :  { %v1776_v10 = vpop.f32.mrb[8].mxu1 }
 0x805   :  { %v2259_v11 = vadd.f32 %v1776_v10, %v1567_v9  ;;  %v849_v12 = vpop.f32.mrb[9].mxu1 }
 0x806   :  { %v850_v13 = vadd.f32 %v1567_v9, %v849_v12 }
 0x807   :  { %v1237_v35 = vrot.slane %v2259_v11, 2  ;;  %v1313_v40 = vrot.slane %v2259_v11, 4  ;;  %v1389_v50 = vrot.slane %v2259_v11, 6 }
 0x808   :  { %v929_v14 = vadd.f32 %v928_v7, %v850_v13  ;;  %v934_v16 = vrot.slane %v850_v13, 2  ;;  %v1010_v21 = vrot.slane %v850_v13, 4  ;;  %v1086_v26 = vrot.slane %v850_v13, 6 }
 0x80a   :  { %2008 = vtanh.f32 %v929_v14 }
 0x814   :  { %v2009_v15 = vpop.eup %2008 }
 0x815   :  { %1797 = vmatmul.mubr.msk.f32.vlgmr.msra.gmra.mrb[10].mxu1 %vm148_vm4, %v2009_v15 }
 0x816   :  { %1952 = vmatpush3.bf16.msra.mxu1 %v2228_v57  ;;  %1818 = vmatprep.mubr.msk.f32.mxu1 %vm2052_vm0, %v2053_v2 }
 0x817   :  { %1953 = vmatprep.subr.bf16.mxu1 %v2051_v1 }
 0x81a   :  { %1955 = vmatpush3.bf16.msra.mxu1 %v2234_v62 }
 0x81b   :  { %1962 = vmatprep.subr.bf16.mxu1 %v2051_v1 }
 0x8e8   :  { %v1005_v17 = vpop.f32.mrb[10].mxu1 }
 0x8e9   :  { %v1006_v18 = vadd.f32 %v1005_v17, %v934_v16  ;;  %v1798_v19 = vpop.f32.mrb[11].mxu1 }
 0x8eb   :  { %2010 = vtanh.f32 %v1006_v18 }
 0x8f5   :  { %v2011_v20 = vpop.eup %2010 }
 0x8f6   :  { %1808 = vmatmul.mubr.msk.f32.vlgmr.msra.gmra.mrb[12].mxu0 %vm148_vm4, %v2011_v20 }
 0x8f7   :  { %1958 = vmatpush3.bf16.msra.mxu0 %v2228_v57  ;;  %1829 = vmatprep.mubr.msk.f32.mxu0 %vm2052_vm0, %v2053_v2 }
 0x8f8   :  { %1959 = vmatprep.subr.bf16.mxu0 %v2051_v1 }
 0x8fb   :  { %1961 = vmatpush3.bf16.msra.mxu0 %v2234_v62 }
 0x8fc   :  { %1968 = vmatprep.subr.bf16.mxu0 %v2051_v1 }
 0x9c9   :  { %v1081_v22 = vpop.f32.mrb[12].mxu0 }
 0x9ca   :  { %v1082_v23 = vadd.f32 %v1081_v22, %v1010_v21  ;;  %v1809_v24 = vpop.f32.mrb[13].mxu0 }
 0x9cc   :  { %2012 = vtanh.f32 %v1082_v23 }
 0x9d6   :  { %v2013_v25 = vpop.eup %2012 }
 0x9d7   :  { %1819 = vmatmul.mubr.msk.f32.vlgmr.msra.gmra.mrb[12].mxu1 %vm148_vm4, %v2013_v25 }
 0x9d8   :  { %1964 = vmatpush3.bf16.msra.mxu1 %v2228_v57  ;;  %1840 = vmatprep.mubr.msk.f32.mxu1 %vm2052_vm0, %v2053_v2 }
 0x9d9   :  { %1965 = vmatprep.subr.bf16.mxu1 %v2051_v1 }
 0x9dc   :  { %1967 = vmatpush3.bf16.msra.mxu1 %v2234_v62 }
 0x9dd   :  { %1974 = vmatprep.subr.bf16.mxu1 %v2051_v1 }
 0xaaa   :  { %v1157_v27 = vpop.f32.mrb[12].mxu1 }
 0xaab   :  { %v1158_v28 = vadd.f32 %v1157_v27, %v1086_v26  ;;  %v1820_v29 = vpop.f32.mrb[13].mxu1 }
 0xaad   :  { %2014 = vtanh.f32 %v1158_v28 }
 0xab7   :  { %v2015_v30 = vpop.eup %2014 }
 0xab8   :  { %1830 = vmatmul.mubr.msk.f32.vlgmr.msra.gmra.mrb[14].mxu0 %vm148_vm4, %v2015_v30 }
 0xab9   :  { %1970 = vmatpush3.bf16.msra.mxu0 %v2228_v57  ;;  %1851 = vmatprep.mubr.msk.f32.mxu0 %vm2052_vm0, %v2053_v2 }
 0xaba   :  { %1971 = vmatprep.subr.bf16.mxu0 %v2051_v1 }
 0xabd   :  { %1973 = vmatpush3.bf16.msra.mxu0 %v2234_v62 }
 0xabe   :  { %1980 = vmatprep.subr.bf16.mxu0 %v2051_v1 }
 0xb8b   :  { %v1231_v31 = vpop.f32.mrb[14].mxu0 }
 0xb8c   :  { %v1232_v32 = vadd.f32 %v1231_v31, %v2259_v11  ;;  %v1831_v33 = vpop.f32.mrb[15].mxu0 }
 0xb8e   :  { %2016 = vtanh.f32 %v1232_v32 }
 0xb98   :  { %v2017_v34 = vpop.eup %2016 }
 0xb99   :  { %1841 = vmatmul.mubr.msk.f32.vlgmr.msra.gmra.mrb[14].mxu1 %vm148_vm4, %v2017_v34 }
 0xb9a   :  { %1976 = vmatpush3.bf16.msra.mxu1 %v2228_v57  ;;  %1862 = vmatprep.mubr.msk.f32.mxu1 %vm2052_vm0, %v2053_v2 }
 0xb9b   :  { %1977 = vmatprep.subr.bf16.mxu1 %v2051_v1 }
 0xb9e   :  { %1979 = vmatpush3.bf16.msra.mxu1 %v2234_v62 }
 0xc6c   :  { %v1308_v36 = vpop.f32.mrb[14].mxu1 }
 0xc6d   :  { %v1309_v37 = vadd.f32 %v1308_v36, %v1237_v35  ;;  %v1842_v38 = vpop.f32.mrb[15].mxu1 }
 0xc6f   :  { %2018 = vtanh.f32 %v1309_v37 }
 0xc79   :  { %v2019_v39 = vpop.eup %2018 }
 0xc7a   :  { %1852 = vmatmul.mubr.msk.f32.vlgmr.msra.gmra.mrb[16].mxu0 %vm148_vm4, %v2019_v39 }
 0xc7b   :  { %1873 = vmatprep.mubr.msk.f32.mxu0 %vm2052_vm0, %v2053_v2  ;;  %v1467_v2 = vld [vmem:[%s2327_s7 + $0x10] sm:$0xff]  ;;  %1982 = vmatpush3.bf16.msra.mxu0 %v1981_v47 }
 0xc7c   :  { %v1984_v49 = vpack.c.bf16 %v1468_v48, %v1467_v2  ;;  %1983 = vmatprep.subr.bf16.mxu0 %v2051_v1 }
 0xc7f   :  { %1985 = vmatpush3.bf16.msra.mxu0 %v1984_v49 }
 0xd4d   :  { %v1384_v41 = vpop.f32.mrb[16].mxu0 }
 0xd4e   :  { %v1385_v42 = vadd.f32 %v1384_v41, %v1313_v40  ;;  %v1853_v43 = vpop.f32.mrb[17].mxu0 }
 0xd50   :  { %2020 = vtanh.f32 %v1385_v42 }
 0xd5a   :  { %v2021_v44 = vpop.eup %2020 }
 0xd5b   :  { %1863 = vmatmul.mubr.msk.f32.vlgmr.msra.gmra.mrb[16].mxu1 %vm148_vm4, %v2021_v44 }
 0xe2e   :  { %v1460_v51 = vpop.f32.mrb[16].mxu1 }
 0xe2f   :  { %v1461_v52 = vadd.f32 %v1460_v51, %v1389_v50  ;;  %v1864_v53 = vpop.f32.mrb[17].mxu1 }
 0xe31   :  { %2022 = vtanh.f32 %v1461_v52 }
 0xe3b   :  { %v2023_v54 = vpop.eup %2022 }
 0xe3c   :  { %1874 = vmatmul.mubr.msk.f32.vlgmr.msra.gmra.mrb[18].mxu0 %vm148_vm4, %v2023_v54 }
 0xf0f   :  { %v1545_v56 = vpop.f32.mrb[18].mxu0 }
 0xf10   :  { %v1546_v57 = vadd.f32 %v1577_v55, %v1545_v56  ;;  %v1875_v58 = vpop.f32.mrb[19].mxu0 }
 0xf12   :  { %1550 = vst.msk [vmem:[%s2329_s9] sm:$0x3] %vm1549_vm5, %v1546_v57 }
 0xf13   :  { %1555 = vsyncpa [#allocation5], 1 }

</bundles_post_ra>
